<compile_context>
chip_gen: v5e
topology: v5e:2x2
jax: 0.10.0
libtpu: 0.0.40
codegen_flags: <defaults>
</compile_context>

<pallas_src>
import jax
import jax.numpy as jnp
from jax.experimental import pallas as pl
from jax.experimental.pallas import tpu as pltpu

IN_FEATURES = 4
HIDDEN = 32
OUT_FEATURES = 3


def iris_mlp_kernel(x_ref, w1_ref, b1_ref, w2_ref, b2_ref, o_ref):
    """One batch tile, batch on the lane (last) axis.

    x_ref  : (4, TILE_B)   input features, lane-dense in batch
    w1_ref : (32, 4)       fc1 weight, PyTorch (out, in) layout (VMEM-resident)
    b1_ref : (32, 1)       fc1 bias as a column
    w2_ref : (3, 32)       fc2 weight (VMEM-resident)
    b2_ref : (3, 1)        fc2 bias as a column
    o_ref  : (3, TILE_B)   logits, lane-dense in batch
    """
    x = x_ref[...]                      # float32, no cast needed
    tile_b = x.shape[-1]

    # fc1: K=4 contraction as 4 unrolled VPU broadcast-MACs (too shallow for
    # the MXU).  Bias broadcast hoisted once per tile.
    h = jnp.broadcast_to(b1_ref[...], (HIDDEN, tile_b))
    for k in range(IN_FEATURES):        # static -> fully unrolled straight-line
        h = h + w1_ref[:, k:k + 1] * x[k:k + 1, :]
    h = jnp.maximum(h, 0.0)

    # fc2 on the MXU: (3, 32) @ (32, TILE_B) -> (3, TILE_B), lane-dense output.
    out = jnp.dot(w2_ref[...], h, preferred_element_type=jnp.float32)
    o_ref[...] = (out + b2_ref[...]).astype(o_ref.dtype)


def iris_nn_forward(x, w1, b1, w2, b2, tile_b=512):
    """Pallas forward of IrisNN.

    x : (B, 4) float32
    w1: (32, 4), b1: (32,)   -- PyTorch nn.Linear (out, in) layout
    w2: (3, 32), b2: (3,)
    returns (B, 3) float32 logits
    """
    B = x.shape[0]
    # Lane-friendly batch tile: multiple of 128, shrunk for small batches.
    tile_b = max(128, min(tile_b, pl.cdiv(B, 128) * 128))
    b_pad = pl.cdiv(B, tile_b) * tile_b
    grid = (b_pad // tile_b,)

    # Wrapper-side layout plumbing: put batch on the lane axis, pad to tile_b.
    x_t = jnp.pad(x.astype(jnp.float32).T, ((0, 0), (0, b_pad - B)))   # (4, B_pad)
    b1_c = b1.reshape(HIDDEN, 1).astype(jnp.float32)
    b2_c = b2.reshape(OUT_FEATURES, 1).astype(jnp.float32)

    flops = 2 * b_pad * (IN_FEATURES * HIDDEN + HIDDEN * OUT_FEATURES)
    bytes_accessed = 4 * (x_t.size + w1.size + b1.size + w2.size + b2.size
                          + OUT_FEATURES * b_pad)

    out_t = pl.pallas_call(
        iris_mlp_kernel,
        out_shape=jax.ShapeDtypeStruct((OUT_FEATURES, b_pad), jnp.float32),
        grid=grid,
        in_specs=[
            pl.BlockSpec((IN_FEATURES, tile_b), lambda i: (0, i)),    # x tile
            pl.BlockSpec((HIDDEN, IN_FEATURES), lambda i: (0, 0)),    # w1 (resident)
            pl.BlockSpec((HIDDEN, 1), lambda i: (0, 0)),              # b1 (resident)
            pl.BlockSpec((OUT_FEATURES, HIDDEN), lambda i: (0, 0)),   # w2 (resident)
            pl.BlockSpec((OUT_FEATURES, 1), lambda i: (0, 0)),        # b2 (resident)
        ],
        out_specs=pl.BlockSpec((OUT_FEATURES, tile_b), lambda i: (0, i)),
        compiler_params=pltpu.CompilerParams(
            dimension_semantics=("parallel",)),
        cost_estimate=pl.CostEstimate(
            flops=flops, transcendentals=0, bytes_accessed=bytes_accessed),
    )(x_t, w1.astype(jnp.float32), b1_c, w2.astype(jnp.float32), b2_c)

    # Back to the PyTorch-facing layout (B, 3), dropping batch padding.
    return out_t[:, :B].T


def init_params(key):
    """Deterministic init matching torch.nn.Linear default
    (uniform +/- 1/sqrt(fan_in)), stored in PyTorch (out, in) layout."""
    k1, k2, k3, k4 = jax.random.split(key, 4)
    bound1 = 1.0 / jnp.sqrt(4.0)
    bound2 = 1.0 / jnp.sqrt(32.0)
    w1 = jax.random.uniform(k1, (HIDDEN, IN_FEATURES), jnp.float32, -bound1, bound1)
    b1 = jax.random.uniform(k2, (HIDDEN,), jnp.float32, -bound1, bound1)
    w2 = jax.random.uniform(k3, (OUT_FEATURES, HIDDEN), jnp.float32, -bound2, bound2)
    b2 = jax.random.uniform(k4, (OUT_FEATURES,), jnp.float32, -bound2, bound2)
    return w1, b1, w2, b2


if __name__ == "__main__":
    key = jax.random.PRNGKey(0)
    kx, kp = jax.random.split(key)
    # Iris features: 4 per sample; small demo batch of 8 (one 128-lane tile).
    x = jax.random.normal(kx, (8, IN_FEATURES), jnp.float32)
    w1, b1, w2, b2 = init_params(kp)

    fwd = jax.jit(iris_nn_forward)   # fuse wrapper pad/transpose/slice into XLA
    out = jax.block_until_ready(fwd(x, w1, b1, w2, b2))

    # Reference check in plain JAX (PyTorch layout: y = x @ W.T + b)
    ref = jnp.maximum(x @ w1.T + b1, 0.0) @ w2.T + b2
    assert out.shape == (8, OUT_FEATURES)
    assert jnp.allclose(out, ref, atol=1e-5, rtol=1e-5)
    print("KERNEL_OK")
</pallas_src>

<mosaic_0001>
module attributes {stable_mosaic.version = 11 : i64} {
  func.func @iris_mlp_kernel(%arg0: i32, %arg1: memref<4x128xf32, #tpu.memory_space<vmem>>, %arg2: memref<32x4xf32, #tpu.memory_space<vmem>>, %arg3: memref<32x1xf32, #tpu.memory_space<vmem>>, %arg4: memref<3x32xf32, #tpu.memory_space<vmem>>, %arg5: memref<3x1xf32, #tpu.memory_space<vmem>>, %arg6: memref<3x128xf32, #tpu.memory_space<vmem>>) attributes {dimension_semantics = [#tpu.dimension_semantics<parallel>], iteration_bounds = array<i64: 1>, scalar_prefetch = 0 : i64, scratch_operands = 0 : i64, tpu.core_type = #tpu.core_type<tc>, window_params = [{transform_indices = @transform_0, window_bounds = array<i64: 4, 128>}, {pipeline_mode = #tpu.pipeline_mode<synchronous>, transform_indices = @transform_1, window_bounds = array<i64: 32, 4>}, {pipeline_mode = #tpu.pipeline_mode<synchronous>, transform_indices = @transform_2, window_bounds = array<i64: 32, 1>}, {pipeline_mode = #tpu.pipeline_mode<synchronous>, transform_indices = @transform_3, window_bounds = array<i64: 3, 32>}, {pipeline_mode = #tpu.pipeline_mode<synchronous>, transform_indices = @transform_4, window_bounds = array<i64: 3, 1>}, {transform_indices = @transform_5, window_bounds = array<i64: 3, 128>}]} {
    %c0 = arith.constant 0 : index
    %c0_0 = arith.constant 0 : index
    %0 = vector.load %arg1[%c0, %c0_0] : memref<4x128xf32, #tpu.memory_space<vmem>>, vector<4x128xf32>
    %c0_1 = arith.constant 0 : index
    %c0_2 = arith.constant 0 : index
    %1 = vector.load %arg3[%c0_1, %c0_2] : memref<32x1xf32, #tpu.memory_space<vmem>>, vector<32x1xf32>
    %2 = vector.shape_cast %1 : vector<32x1xf32> to vector<32x1xf32>
    %3 = vector.broadcast %2 : vector<32x1xf32> to vector<32x128xf32>
    %c0_3 = arith.constant 0 : index
    %c0_4 = arith.constant 0 : index
    %4 = vector.load %arg2[%c0_3, %c0_4] : memref<32x4xf32, #tpu.memory_space<vmem>>, vector<32x1xf32>
    %5 = vector.extract_strided_slice %0 {offsets = [0, 0], sizes = [1, 128], strides = [1, 1]} : vector<4x128xf32> to vector<1x128xf32>
    %6 = vector.broadcast %4 : vector<32x1xf32> to vector<32x128xf32>
    %7 = vector.broadcast %5 : vector<1x128xf32> to vector<32x128xf32>
    %8 = arith.mulf %6, %7 : vector<32x128xf32>
    %9 = arith.addf %3, %8 : vector<32x128xf32>
    %c0_5 = arith.constant 0 : index
    %c1 = arith.constant 1 : index
    %10 = vector.load %arg2[%c0_5, %c1] : memref<32x4xf32, #tpu.memory_space<vmem>>, vector<32x1xf32>
    %11 = vector.extract_strided_slice %0 {offsets = [1, 0], sizes = [1, 128], strides = [1, 1]} : vector<4x128xf32> to vector<1x128xf32>
    %12 = vector.broadcast %10 : vector<32x1xf32> to vector<32x128xf32>
    %13 = vector.broadcast %11 : vector<1x128xf32> to vector<32x128xf32>
    %14 = arith.mulf %12, %13 : vector<32x128xf32>
    %15 = arith.addf %9, %14 : vector<32x128xf32>
    %c0_6 = arith.constant 0 : index
    %c2 = arith.constant 2 : index
    %16 = vector.load %arg2[%c0_6, %c2] : memref<32x4xf32, #tpu.memory_space<vmem>>, vector<32x1xf32>
    %17 = vector.extract_strided_slice %0 {offsets = [2, 0], sizes = [1, 128], strides = [1, 1]} : vector<4x128xf32> to vector<1x128xf32>
    %18 = vector.broadcast %16 : vector<32x1xf32> to vector<32x128xf32>
    %19 = vector.broadcast %17 : vector<1x128xf32> to vector<32x128xf32>
    %20 = arith.mulf %18, %19 : vector<32x128xf32>
    %21 = arith.addf %15, %20 : vector<32x128xf32>
    %c0_7 = arith.constant 0 : index
    %c3 = arith.constant 3 : index
    %22 = vector.load %arg2[%c0_7, %c3] : memref<32x4xf32, #tpu.memory_space<vmem>>, vector<32x1xf32>
    %23 = vector.extract_strided_slice %0 {offsets = [3, 0], sizes = [1, 128], strides = [1, 1]} : vector<4x128xf32> to vector<1x128xf32>
    %24 = vector.broadcast %22 : vector<32x1xf32> to vector<32x128xf32>
    %25 = vector.broadcast %23 : vector<1x128xf32> to vector<32x128xf32>
    %26 = arith.mulf %24, %25 : vector<32x128xf32>
    %27 = arith.addf %21, %26 : vector<32x128xf32>
    %cst = arith.constant 0.000000e+00 : f32
    %28 = vector.broadcast %cst : f32 to vector<32x128xf32>
    %29 = arith.maximumf %27, %28 : vector<32x128xf32>
    %c0_8 = arith.constant 0 : index
    %c0_9 = arith.constant 0 : index
    %30 = vector.load %arg4[%c0_8, %c0_9] : memref<3x32xf32, #tpu.memory_space<vmem>>, vector<3x32xf32>
    %cst_10 = arith.constant dense<0.000000e+00> : vector<3x128xf32>
    %31 = tpu.matmul %30, %29, %cst_10 {dimension_numbers = #tpu.dot_dimension_numbers<[1], [0], [0], [1], [0, 0, 1, 1], [], []>} : vector<3x32xf32>, vector<32x128xf32>, vector<3x128xf32> -> vector<3x128xf32>
    %c0_11 = arith.constant 0 : index
    %c0_12 = arith.constant 0 : index
    %32 = vector.load %arg5[%c0_11, %c0_12] : memref<3x1xf32, #tpu.memory_space<vmem>>, vector<3x1xf32>
    %33 = vector.broadcast %32 : vector<3x1xf32> to vector<3x128xf32>
    %34 = arith.addf %31, %33 : vector<3x128xf32>
    %c0_13 = arith.constant 0 : index
    %c0_14 = arith.constant 0 : index
    %35 = vector.load %arg6[%c0_13, %c0_14] : memref<3x128xf32, #tpu.memory_space<vmem>>, vector<3x128xf32>
    tpu.vector_store %arg6[%c0_13, %c0_14], %34 {strides = array<i32>} : memref<3x128xf32, #tpu.memory_space<vmem>>, vector<3x128xf32>,
    return
  }
  func.func @transform_0(%arg0: i32) -> (i32, i32) {
    %c0_i32 = arith.constant 0 : i32
    %c0_i32_0 = arith.constant 0 : i32
    return %c0_i32, %arg0 : i32, i32
  }
  func.func @transform_1(%arg0: i32) -> (i32, i32) {
    %c0_i32 = arith.constant 0 : i32
    %c0_i32_0 = arith.constant 0 : i32
    %c0_i32_1 = arith.constant 0 : i32
    return %c0_i32, %c0_i32_0 : i32, i32
  }
  func.func @transform_2(%arg0: i32) -> (i32, i32) {
    %c0_i32 = arith.constant 0 : i32
    %c0_i32_0 = arith.constant 0 : i32
    %c0_i32_1 = arith.constant 0 : i32
    return %c0_i32, %c0_i32_0 : i32, i32
  }
  func.func @transform_3(%arg0: i32) -> (i32, i32) {
    %c0_i32 = arith.constant 0 : i32
    %c0_i32_0 = arith.constant 0 : i32
    %c0_i32_1 = arith.constant 0 : i32
    return %c0_i32, %c0_i32_0 : i32, i32
  }
  func.func @transform_4(%arg0: i32) -> (i32, i32) {
    %c0_i32 = arith.constant 0 : i32
    %c0_i32_0 = arith.constant 0 : i32
    %c0_i32_1 = arith.constant 0 : i32
    return %c0_i32, %c0_i32_0 : i32, i32
  }
  func.func @transform_5(%arg0: i32) -> (i32, i32) {
    %c0_i32 = arith.constant 0 : i32
    %c0_i32_0 = arith.constant 0 : i32
    return %c0_i32, %arg0 : i32, i32
  }
}

</mosaic_0001>

<bundles_post_ra>
// kernel: iris_nn_forward.1
= control target key start
LH: loop header
LB: loop body
LE: loop exit
PB: predicated region body
PF: predicated region fallthrough
CT: control target
= control target key end

     0   :  { %v217_v0 = vmov 0   ;;  %v218_v6 = vmov 1   ;;  %v219_v8 = vmov 2   ;;  %v220_v11 = vmov 3   ;;  %s287_s2 = inlined_call_operand.vmem [shape: f32[32,1], index: 2, kind: input, shape index: {}]   ;;  %s288_s1 = inlined_call_operand.vmem [shape: f32[32,4], index: 1, kind: input, shape index: {}]   ;;  %s289_s0 = inlined_call_operand.vmem [shape: f32[4,128], index: 0, kind: input, shape index: {}]   ;;  %s290_s4 = inlined_call_operand.vmem [shape: f32[3,1], index: 4, kind: input, shape index: {}]   ;;  %s291_s3 = inlined_call_operand.vmem [shape: f32[3,32], index: 3, kind: input, shape index: {}]   ;;  %s292_s5 = inlined_call_operand.vmem [shape: f32[3,128], index: 5, kind: output, shape index: {}]  }
   0x1   :  { %201 = vset.pattern.permute.xlu2 %v217_v0  ;;  %199 = vset.pattern.permute.xlu1 %v217_v0  ;;  %v23_v1 = vld [vmem:[%s287_s2 + $0x10] sm:$0xff]  ;;  %v48_v2 = vld [vmem:[%s288_s1 + $0x18] sm:$0xff]  ;;  %v46_v4 = vld [vmem:[%s288_s1 + $0x8] sm:$0xff]  ;;  %vm164_vm0 = vcmask 261120  }
   0x2   :  { %v47_v3 = vld [vmem:[%s288_s1 + $0x10] sm:$0xff]  ;;  %198 = vset.pattern.permute.xlu0 %v217_v0  ;;  %37 = vperm.xlu2 %201, %v23_v1   ;;  %v24_v5 = vld [vmem:[%s287_s2 + $0x18] sm:$0xff]  ;;  %v22_v7 = vld [vmem:[%s287_s2 + $0x8] sm:$0xff] }
   0x3   :  { %66 = vperm.xlu0 %198, %v48_v2   ;;  %61 = vperm.xlu1 %199, %v47_v3   ;;  %v45_v9 = vld [vmem:[%s288_s1] sm:$0xff] }
   0x4   :  { %v21_v10 = vld [vmem:[%s287_s2] sm:$0xff] }
   0x5   :  { %v20_v23 = vld [vmem:[%s289_s0] sm:$0xf] }
   0x6   :  { %v69_v25 = vperm.slane %v20_v23, 0  ;;  %v94_v28 = vperm.slane %v20_v23, 1  ;;  %v119_v32 = vperm.slane %v20_v23, 2  ;;  %v144_v41 = vperm.slane %v20_v23, 3  ;;  %v158_v57 = vld [vmem:[%s290_s4] sm:$0x7] }
   0xa   :  { %56 = vperm.xlu2 %201, %v46_v4  }
   0xb   :  { %42 = vperm.xlu0 %198, %v24_v5   ;;  %200 = vset.pattern.permute.xlu1 %v218_v6 }
   0xc   :  { %91 = vperm.xlu1 %200, %v48_v2  }
  0x12   :  { %32 = vperm.xlu2 %201, %v22_v7  }
  0x13   :  { %202 = vset.pattern.permute.xlu0 %v218_v6 }
  0x14   :  { %87 = vperm.xlu0 %202, %v47_v3   ;;  %203 = vset.pattern.permute.xlu1 %v219_v8 }
  0x15   :  { %116 = vperm.xlu1 %203, %v48_v2  }
  0x1a   :  { %205 = vset.pattern.permute.xlu2 %v218_v6 }
  0x1b   :  { %83 = vperm.xlu2 %205, %v46_v4  }
  0x1c   :  { %206 = vset.pattern.permute.xlu0 %v219_v8 }
  0x1d   :  { %112 = vperm.xlu0 %206, %v47_v3   ;;  %204 = vset.pattern.permute.xlu1 %v217_v0 }
  0x1e   :  { %51 = vperm.xlu1 %204, %v45_v9  }
  0x23   :  { %208 = vset.pattern.permute.xlu2 %v217_v0 }
  0x24   :  { %27 = vperm.xlu2 %208, %v21_v10   ;;  %v157_v10 = vld [vmem:[%s291_s3] sm:$0x7] }
  0x25   :  { %211 = vset.pattern.permute.xlu0 %v220_v11 }
  0x26   :  { %137 = vperm.xlu0 %211, %v47_v3   ;;  %207 = vset.pattern.permute.xlu1 %v220_v11 }
  0x27   :  { %141 = vperm.xlu1 %207, %v48_v2  }
  0x2c   :  { %210 = vset.pattern.permute.xlu2 %v219_v8 }
  0x2d   :  { %108 = vperm.xlu2 %210, %v46_v4  }
  0x2e   :  { %216 = vset.pattern.permute.xlu0 %v217_v0 }
  0x2f   :  { %209 = vset.pattern.permute.xlu1 %v218_v6 }
  0x30   :  { %79 = vperm.xlu1 %209, %v45_v9  }
  0x35   :  { %213 = vset.pattern.permute.xlu2 %v220_v11 }
  0x36   :  { %133 = vperm.xlu2 %213, %v46_v4  }
  0x38   :  { %212 = vset.pattern.permute.xlu1 %v219_v8 }
  0x39   :  { %104 = vperm.xlu1 %212, %v45_v9  }
  0x3e   :  { %215 = vset.pattern.permute.xlu2 %v217_v0 }
  0x3f   :  { %161 = vperm.xlu2 %215, %v158_v57  }
  0x41   :  { %214 = vset.pattern.permute.xlu1 %v220_v11 }
  0x42   :  { %129 = vperm.xlu1 %214, %v45_v9  }
  0x5c   :  { %v38_v12 = vpop.permute.xlu2 %37 }
  0x64   :  { %v57_v13 = vpop.permute.xlu2 %56 }
  0x65   :  { %v71_v30 = vmul.f32 %v69_v25, %v57_v13 }
  0x6c   :  { %v33_v14 = vpop.permute.xlu2 %32 }
  0x6d   :  { %v75_v36 = vadd.f32 %v71_v30, %v33_v14 }
  0x75   :  { %v62_v15 = vpop.permute.xlu1 %61  ;;  %v67_v16 = vpop.permute.xlu0 %66 }
  0x76   :  { %v84_v17 = vpop.permute.xlu2 %83  ;;  %v73_v27 = vmul.f32 %v69_v25, %v67_v16  ;;  %v72_v31 = vmul.f32 %v69_v25, %v62_v15 }
  0x77   :  { %v96_v37 = vmul.f32 %v94_v28, %v84_v17 }
  0x78   :  { %v76_v38 = vadd.f32 %v72_v31, %v38_v12 }
  0x79   :  { %v100_v47 = vadd.f32 %v96_v37, %v75_v36 }
  0x7d   :  { %v43_v18 = vpop.permute.xlu0 %42 }
  0x7e   :  { %v92_v19 = vpop.permute.xlu1 %91  ;;  %v28_v20 = vpop.permute.xlu2 %27  ;;  %v77_v33 = vadd.f32 %v73_v27, %v43_v18 }
  0x7f   :  { %v98_v34 = vmul.f32 %v94_v28, %v92_v19 }
  0x81   :  { %v102_v43 = vadd.f32 %v98_v34, %v77_v33 }
  0x86   :  { %v88_v21 = vpop.permute.xlu0 %87 }
  0x87   :  { %v117_v22 = vpop.permute.xlu1 %116  ;;  %v109_v24 = vpop.permute.xlu2 %108  ;;  %v97_v35 = vmul.f32 %v94_v28, %v88_v21 }
  0x88   :  { %v123_v39 = vmul.f32 %v119_v32, %v117_v22  ;;  %v121_v45 = vmul.f32 %v119_v32, %v109_v24 }
  0x89   :  { %v101_v44 = vadd.f32 %v97_v35, %v76_v38 }
  0x8a   :  { %v127_v53 = vadd.f32 %v123_v39, %v102_v43  ;;  %v125_v54 = vadd.f32 %v121_v45, %v100_v47 }
  0x8f   :  { %v113_v26 = vpop.permute.xlu0 %112 }
  0x90   :  { %v52_v29 = vpop.permute.xlu1 %51  ;;  %v122_v40 = vmul.f32 %v119_v32, %v113_v26  ;;  %v134_v42 = vpop.permute.xlu2 %133 }
  0x91   :  { %v146_v51 = vmul.f32 %v144_v41, %v134_v42  ;;  %v70_v0 = vmul.f32 %v69_v25, %v52_v29 }
  0x92   :  { %v126_v50 = vadd.f32 %v122_v40, %v101_v44 }
  0x93   :  { %v150_v59 = vadd.f32 %v146_v51, %v125_v54  ;;  %v74_v2 = vadd.f32 %v70_v0, %v28_v20 }
  0x95   :  { %v154_v62 = vmax.f32 %v150_v59, 0.0 }
  0x98   :  { %v138_v46 = vpop.permute.xlu0 %137 }
  0x99   :  { %v147_v48 = vmul.f32 %v144_v41, %v138_v46  ;;  %v142_v49 = vpop.permute.xlu1 %141  ;;  %v162_v11 = vpop.permute.xlu2 %161 }
  0x9a   :  { %v148_v52 = vmul.f32 %v144_v41, %v142_v49 }
  0x9b   :  { %v151_v56 = vadd.f32 %v147_v48, %v126_v50 }
  0x9c   :  { %v152_v55 = vadd.f32 %v148_v52, %v127_v53 }
  0x9d   :  { %v155_v60 = vmax.f32 %v151_v56, 0.0 }
  0x9e   :  { %v156_v58 = vmax.f32 %v152_v55, 0.0 }
  0xa0   :  { %180 = vmatpush.msra.mxu0 %v156_v58 }
  0xa2   :  { %v80_v61 = vpop.permute.xlu1 %79  ;;  %181 = vmatpush.msra.mxu0 %v155_v60 }
  0xa3   :  { %v95_v1 = vmul.f32 %v94_v28, %v80_v61 }
  0xa4   :  { %182 = vmatpush.msra.mxu0 %v154_v62 }
  0xa5   :  { %v99_v4 = vadd.f32 %v95_v1, %v74_v2 }
  0xab   :  { %v105_v63 = vpop.permute.xlu1 %104 }
  0xac   :  { %v120_v3 = vmul.f32 %v119_v32, %v105_v63 }
  0xae   :  { %v124_v6 = vadd.f32 %v120_v3, %v99_v4 }
  0xb4   :  { %v130_v5 = vpop.permute.xlu1 %129 }
  0xb5   :  { %v145_v7 = vmul.f32 %v144_v41, %v130_v5 }
  0xb7   :  { %v149_v8 = vadd.f32 %v145_v7, %v124_v6 }
  0xb9   :  { %v153_v9 = vmax.f32 %v149_v8, 0.0 }
  0xbb   :  { %183 = vmatpush.msra.mxu0 %v153_v9 }
  0xbc   :  { %193 = vmatmul.msk.f32.vlgmr.msra.gmra.mxu0 %vm164_vm0, %v157_v10 }
 0x139   :  { %v185_v12 = vpop.f32.mrf.mxu0 }
 0x13a   :  { %v186_v13 = vadd.f32 %v185_v12, %v162_v11 }
 0x13c   :  { %188 = vst [vmem:[%s292_s5] sm:$0x7] %v186_v13 }

</bundles_post_ra>
